<compile_context>
chip_gen: v7x
topology: tpu7x:2x2x1
jax: 0.10.0
libtpu: 0.0.40
codegen_flags: <defaults>
</compile_context>

<pallas_src>
import jax
import jax.numpy as jnp
from jax.experimental import pallas as pl
from jax.experimental.pallas import tpu as pltpu

LANE = 128
SUBLANE = 8


def _round_up(x, m):
    return (x + m - 1) // m * m


# ----------------------------- Pallas kernel ------------------------------- #
def _text_sentiment_kernel(seg_ref, text_ref, emb_ref, w1_ref, b1_ref, w3_ref,
                           b3_ref, out_ref, sum_acc, cnt_acc):
    i = pl.program_id(0)                     # batch tile   (parallel)
    k = pl.program_id(1)                     # token tile   (arbitrary / reduce)
    tb = out_ref.shape[0]
    tt = seg_ref.shape[1]
    v_pad = emb_ref.shape[0]

    @pl.when(k == 0)
    def _():
        sum_acc[...] = jnp.zeros_like(sum_acc)
        cnt_acc[...] = jnp.zeros_like(cnt_acc)

    # 0/1 bag-membership tile built in-kernel from int32 bag ids (VALU).
    bag_ids = jax.lax.broadcasted_iota(jnp.int32, (tb, tt), 0) + i * tb
    hits = bag_ids == seg_ref[...]                              # [tb, tt] bool
    membership = hits.astype(jnp.bfloat16)                      # exact 0/1

    # In-kernel embedding-row gather via a one-hot matmul against the
    # VMEM-resident table (exact: selects single bf16 rows).
    onehot = (jax.lax.broadcasted_iota(jnp.int32, (tt, v_pad), 1)
              == text_ref[...]).astype(jnp.bfloat16)            # [tt, V_pad]
    gathered = jnp.dot(onehot, emb_ref[...],
                       preferred_element_type=jnp.float32)      # [tt, D_pad]

    # EmbeddingBag sum pooling, accumulated in f32 across the token grid axis.
    sum_acc[...] += jnp.dot(membership, gathered.astype(jnp.bfloat16),
                            preferred_element_type=jnp.float32)
    cnt_acc[...] += jnp.sum(hits.astype(jnp.float32), axis=1, keepdims=True)

    @pl.when(k == pl.num_programs(1) - 1)
    def _():
        # mean mode: divide by bag length (empty bags clamp to 1 -> zeros,
        # matching PyTorch's zero output for empty bags).
        inv_len = pl.reciprocal(jnp.maximum(cnt_acc[...], 1.0), approx=True)
        pooled = sum_acc[...] * inv_len                         # f32 [tb, D]
        h = jax.nn.sigmoid(
            jnp.dot(pooled.astype(w1_ref.dtype), w1_ref[...],
                    preferred_element_type=jnp.float32) + b1_ref[...])
        out = jax.nn.sigmoid(
            jnp.dot(h.astype(w3_ref.dtype), w3_ref[...],
                    preferred_element_type=jnp.float32) + b3_ref[...])
        out_ref[...] = out.astype(out_ref.dtype)


def _text_sentiment_pallas(seg, text, emb, w1, b1, w3, b3, *, tb, tt, b_pad):
    T_pad = seg.shape[1]
    V_pad, D_pad = emb.shape
    H_pad = w1.shape[1]
    C_pad = w3.shape[1]
    nb = b_pad // tb
    nt = T_pad // tt
    grid = (nb, nt)

    cost = pl.CostEstimate(
        flops=(nb * nt * 2 * (tt * V_pad * D_pad + tb * tt * D_pad)
               + nb * 2 * tb * (D_pad * H_pad + H_pad * C_pad)),
        transcendentals=b_pad * (H_pad + C_pad + 1),
        bytes_accessed=(seg.size * 4 + text.size * 4
                        + (emb.size + w1.size + w3.size) * 2
                        + (b1.size + b3.size) * 4
                        + b_pad * C_pad * 4),
    )

    return pl.pallas_call(
        _text_sentiment_kernel,
        out_shape=jax.ShapeDtypeStruct((b_pad, C_pad), jnp.float32),
        grid=grid,
        in_specs=[
            pl.BlockSpec((1, tt), lambda i, k: (0, k)),         # bag ids  int32
            pl.BlockSpec((tt, 1), lambda i, k: (k, 0)),         # token ids int32
            pl.BlockSpec((V_pad, D_pad), lambda i, k: (0, 0)),  # emb table bf16
            pl.BlockSpec((D_pad, H_pad), lambda i, k: (0, 0)),  # w1
            pl.BlockSpec((1, H_pad), lambda i, k: (0, 0)),      # b1
            pl.BlockSpec((H_pad, C_pad), lambda i, k: (0, 0)),  # w3
            pl.BlockSpec((1, C_pad), lambda i, k: (0, 0)),      # b3
        ],
        out_specs=pl.BlockSpec((tb, C_pad), lambda i, k: (i, 0)),
        scratch_shapes=[pltpu.VMEM((tb, D_pad), jnp.float32),   # pooled sums
                        pltpu.VMEM((tb, 1), jnp.float32)],      # bag counts
        compiler_params=pltpu.CompilerParams(
            dimension_semantics=("parallel", "arbitrary"),
            vmem_limit_bytes=48 * 1024 * 1024,
        ),
        cost_estimate=cost,
    )(seg, text, emb, w1, b1, w3, b3)


# ------------------------------ JAX wrapper -------------------------------- #
def text_sentiment_forward(text, offsets, padded_params, num_class):
    """text: int32 [T] flat token ids; offsets: int32 [B] bag starts (offsets[0]==0)."""
    emb_p, w1_p, b1_p, w3_p, b3_p = padded_params
    text = text.astype(jnp.int32)
    offsets = offsets.astype(jnp.int32)
    T = text.shape[0]
    B = offsets.shape[0]

    # bag id for every flat token (EmbeddingBag: offsets monotone, offsets[0]==0)
    seg = (jnp.searchsorted(offsets, jnp.arange(T, dtype=jnp.int32),
                            side="right").astype(jnp.int32) - 1)

    # Token-axis tiling (trailing "arbitrary" grid axis). Padded slots map to
    # bag -1 so they never match any bag row.
    tt = min(512, _round_up(T, LANE))
    T_pad = _round_up(T, tt)
    seg = jnp.pad(seg, (0, T_pad - T), constant_values=-1)[None, :]   # [1, T_pad]
    text = jnp.pad(text, (0, T_pad - T))[:, None]                     # [T_pad, 1]

    # Batch tiling: guarantee >= 2 "parallel" grid steps (v7x megacore), cap
    # the tile at 128 rows (matches v5e's 128-wide MXU with no efficiency loss).
    if B <= 128:
        tb = max(SUBLANE, _round_up((B + 1) // 2, SUBLANE))
        B_pad = 2 * tb
    else:
        tb = 128
        B_pad = _round_up(B, 2 * tb)

    # TODO(synk): for large vocabularies (table >> VMEM) fall back to an
    # XLA-side row gather streamed over the token grid axis; here the padded
    # table is tiny and stays resident in VMEM.
    out = _text_sentiment_pallas(seg, text, emb_p, w1_p, b1_p, w3_p, b3_p,
                                 tb=tb, tt=tt, b_pad=B_pad)
    return out[:B, :num_class]


# ------------------------- deterministic parameters ------------------------ #
def init_params(key, vocab_size, embed_dim, num_class, hidden_dim=16):
    initrange = 0.5
    k_emb, k_w1, k_w3 = jax.random.split(key, 3)
    # nn.EmbeddingBag(vocab_size, embed_dim).weight ~ U(-0.5, 0.5)
    emb = jax.random.uniform(k_emb, (vocab_size, embed_dim), jnp.float32,
                             -initrange, initrange)
    # nn.Linear weights ~ U(-0.5, 0.5), biases zero; stored transposed (x @ W).
    w1 = jax.random.uniform(k_w1, (hidden_dim, embed_dim), jnp.float32,
                            -initrange, initrange).T
    b1 = jnp.zeros((hidden_dim,), jnp.float32)
    w3 = jax.random.uniform(k_w3, (num_class, hidden_dim), jnp.float32,
                            -initrange, initrange).T
    b3 = jnp.zeros((num_class,), jnp.float32)
    # TODO(synk): sparse=True embedding gradients have no Pallas equivalent; forward is dense.
    return emb, w1, b1, w3, b3


def pad_params(params):
    """Zero-pad vocab/feature dims to lane width; cast MXU operands to bf16."""
    emb, w1, b1, w3, b3 = params
    V, D = emb.shape
    H = w1.shape[1]
    C = w3.shape[1]
    V_pad, D_pad, H_pad, C_pad = (_round_up(d, LANE) for d in (V, D, H, C))
    emb_p = jnp.pad(emb, ((0, V_pad - V), (0, D_pad - D))).astype(jnp.bfloat16)
    w1_p = jnp.pad(w1, ((0, D_pad - D), (0, H_pad - H))).astype(jnp.bfloat16)
    b1_p = jnp.pad(b1, (0, H_pad - H)).astype(jnp.float32)[None, :]
    w3_p = jnp.pad(w3, ((0, H_pad - H), (0, C_pad - C))).astype(jnp.bfloat16)
    b3_p = jnp.pad(b3, (0, C_pad - C)).astype(jnp.float32)[None, :]
    return emb_p, w1_p, b1_p, w3_p, b3_p


if __name__ == "__main__":
    vocab_size, embed_dim, num_class, hidden_dim = 64, 32, 4, 16
    batch = 8

    key = jax.random.PRNGKey(0)
    k_param, k_text = jax.random.split(key)
    params = init_params(k_param, vocab_size, embed_dim, num_class, hidden_dim)
    padded = pad_params(params)

    # deterministic ragged bags: lengths per bag, flat token stream + offsets
    lengths = jnp.array([3, 7, 5, 5, 4, 6, 5, 5], dtype=jnp.int32)
    assert lengths.shape[0] == batch
    total_tokens = int(lengths.sum())
    text = jax.random.randint(k_text, (total_tokens,), 0, vocab_size, dtype=jnp.int32)
    offsets = jnp.concatenate(
        [jnp.zeros((1,), jnp.int32), jnp.cumsum(lengths)[:-1].astype(jnp.int32)]
    )

    fwd = jax.jit(text_sentiment_forward, static_argnums=(3,))
    out = fwd(text, offsets, padded, num_class)
    out = jax.block_until_ready(out)
    assert out.shape == (batch, num_class)

    # pure-JAX f32 reference (original, un-padded weights)
    emb, w1, b1, w3, b3 = params
    seg_ref = (jnp.searchsorted(offsets, jnp.arange(total_tokens, dtype=jnp.int32),
                                side="right") - 1)
    pooled_ref = jnp.zeros((batch, embed_dim), jnp.float32).at[seg_ref].add(emb[text])
    cnt_ref = jnp.zeros((batch,), jnp.float32).at[seg_ref].add(1.0)
    pooled_ref = pooled_ref / jnp.maximum(cnt_ref, 1.0)[:, None]
    h_ref = jax.nn.sigmoid(pooled_ref @ w1 + b1[None, :])
    out_ref = jax.nn.sigmoid(h_ref @ w3 + b3[None, :])
    assert jnp.allclose(out, out_ref, atol=2e-2), (out, out_ref)

    print("KERNEL_OK")
</pallas_src>

<mosaic_0001>
module attributes {stable_mosaic.version = 11 : i64} {
  func.func @_text_sentiment_kernel(%arg0: i32, %arg1: i32, %arg2: memref<1x128xi32, #tpu.memory_space<vmem>>, %arg3: memref<128x1xi32, #tpu.memory_space<vmem>>, %arg4: memref<128x128xbf16, #tpu.memory_space<vmem>>, %arg5: memref<128x128xbf16, #tpu.memory_space<vmem>>, %arg6: memref<1x128xf32, #tpu.memory_space<vmem>>, %arg7: memref<128x128xbf16, #tpu.memory_space<vmem>>, %arg8: memref<1x128xf32, #tpu.memory_space<vmem>>, %arg9: memref<8x128xf32, #tpu.memory_space<vmem>>, %arg10: memref<8x128xf32, #tpu.memory_space<vmem>>, %arg11: memref<8x1xf32, #tpu.memory_space<vmem>>) attributes {dimension_semantics = [#tpu.dimension_semantics<parallel>, #tpu.dimension_semantics<arbitrary>], iteration_bounds = array<i64: 2, 1>, scalar_prefetch = 0 : i64, scratch_operands = 2 : i64, tpu.core_type = #tpu.core_type<tc>, window_params = [{transform_indices = @transform_0, window_bounds = array<i64: 1, 128>}, {transform_indices = @transform_1, window_bounds = array<i64: 128, 1>}, {pipeline_mode = #tpu.pipeline_mode<synchronous>, transform_indices = @transform_2, window_bounds = array<i64: 128, 128>}, {pipeline_mode = #tpu.pipeline_mode<synchronous>, transform_indices = @transform_3, window_bounds = array<i64: 128, 128>}, {pipeline_mode = #tpu.pipeline_mode<synchronous>, transform_indices = @transform_4, window_bounds = array<i64: 1, 128>}, {pipeline_mode = #tpu.pipeline_mode<synchronous>, transform_indices = @transform_5, window_bounds = array<i64: 128, 128>}, {pipeline_mode = #tpu.pipeline_mode<synchronous>, transform_indices = @transform_6, window_bounds = array<i64: 1, 128>}, {transform_indices = @transform_7, window_bounds = array<i64: 8, 128>}]} {
    %c0_i32 = arith.constant 0 : i32
    %0 = arith.cmpi eq, %arg1, %c0_i32 : i32
    %1 = arith.extui %0 : i1 to i32
    %c0_i32_0 = arith.constant 0 : i32
    %2 = arith.cmpi ne, %1, %c0_i32_0 : i32
    scf.if %2 {
      %cst_18 = arith.constant 0.000000e+00 : f32
      %37 = vector.broadcast %cst_18 : f32 to vector<8x128xf32>
      %c0_19 = arith.constant 0 : index
      %c0_20 = arith.constant 0 : index
      %38 = vector.load %arg10[%c0_19, %c0_20] : memref<8x128xf32, #tpu.memory_space<vmem>>, vector<8x128xf32>
      tpu.vector_store %arg10[%c0_19, %c0_20], %37 {strides = array<i32>} : memref<8x128xf32, #tpu.memory_space<vmem>>, vector<8x128xf32>,
      %cst_21 = arith.constant 0.000000e+00 : f32
      %39 = vector.broadcast %cst_21 : f32 to vector<8x1xf32>
      %c0_22 = arith.constant 0 : index
      %c0_23 = arith.constant 0 : index
      %40 = vector.load %arg11[%c0_22, %c0_23] : memref<8x1xf32, #tpu.memory_space<vmem>>, vector<8x1xf32>
      tpu.vector_store %arg11[%c0_22, %c0_23], %39 {strides = array<i32>} : memref<8x1xf32, #tpu.memory_space<vmem>>, vector<8x1xf32>,
    } else {
    }
    %3 = tpu.iota {dimensions = array<i32: 0>} : vector<8x128xi32>
    %c8_i32 = arith.constant 8 : i32
    %4 = arith.muli %arg0, %c8_i32 : i32
    %5 = vector.broadcast %4 : i32 to vector<8x128xi32>
    %6 = arith.addi %3, %5 : vector<8x128xi32>
    %c0 = arith.constant 0 : index
    %c0_1 = arith.constant 0 : index
    %7 = vector.load %arg2[%c0, %c0_1] : memref<1x128xi32, #tpu.memory_space<vmem>>, vector<1x128xi32>
    %8 = vector.broadcast %7 : vector<1x128xi32> to vector<8x128xi32>
    %9 = arith.cmpi eq, %6, %8 : vector<8x128xi32>
    %10 = arith.extui %9 : vector<8x128xi1> to vector<8x128xi32>
    %11 = arith.sitofp %10 : vector<8x128xi32> to vector<8x128xf32>
    %12 = arith.truncf %11 : vector<8x128xf32> to vector<8x128xbf16>
    %13 = tpu.iota {dimensions = array<i32: 1>} : vector<128x128xi32>
    %c0_2 = arith.constant 0 : index
    %c0_3 = arith.constant 0 : index
    %14 = vector.load %arg3[%c0_2, %c0_3] : memref<128x1xi32, #tpu.memory_space<vmem>>, vector<128x1xi32>
    %15 = vector.broadcast %14 : vector<128x1xi32> to vector<128x128xi32>
    %16 = arith.cmpi eq, %13, %15 : vector<128x128xi32>
    %17 = arith.extui %16 : vector<128x128xi1> to vector<128x128xi32>
    %18 = arith.sitofp %17 : vector<128x128xi32> to vector<128x128xf32>
    %19 = arith.truncf %18 : vector<128x128xf32> to vector<128x128xbf16>
    %c0_4 = arith.constant 0 : index
    %c0_5 = arith.constant 0 : index
    %20 = vector.load %arg4[%c0_4, %c0_5] : memref<128x128xbf16, #tpu.memory_space<vmem>>, vector<128x128xbf16>
    %cst = arith.constant dense<0.000000e+00> : vector<128x128xf32>
    %21 = tpu.matmul %19, %20, %cst {dimension_numbers = #tpu.dot_dimension_numbers<[1], [0], [0], [1], [0, 0, 1, 1], [], []>} : vector<128x128xbf16>, vector<128x128xbf16>, vector<128x128xf32> -> vector<128x128xf32>
    %c0_6 = arith.constant 0 : index
    %c0_7 = arith.constant 0 : index
    %22 = vector.load %arg10[%c0_6, %c0_7] : memref<8x128xf32, #tpu.memory_space<vmem>>, vector<8x128xf32>
    %23 = arith.truncf %21 : vector<128x128xf32> to vector<128x128xbf16>
    %cst_8 = arith.constant dense<0.000000e+00> : vector<8x128xf32>
    %24 = tpu.matmul %12, %23, %cst_8 {dimension_numbers = #tpu.dot_dimension_numbers<[1], [0], [0], [1], [0, 0, 1, 1], [], []>} : vector<8x128xbf16>, vector<128x128xbf16>, vector<8x128xf32> -> vector<8x128xf32>
    %25 = arith.addf %22, %24 : vector<8x128xf32>
    %c0_9 = arith.constant 0 : index
    %c0_10 = arith.constant 0 : index
    %26 = vector.load %arg10[%c0_9, %c0_10] : memref<8x128xf32, #tpu.memory_space<vmem>>, vector<8x128xf32>
    tpu.vector_store %arg10[%c0_9, %c0_10], %25 {strides = array<i32>} : memref<8x128xf32, #tpu.memory_space<vmem>>, vector<8x128xf32>,
    %c0_11 = arith.constant 0 : index
    %c0_12 = arith.constant 0 : index
    %27 = vector.load %arg11[%c0_11, %c0_12] : memref<8x1xf32, #tpu.memory_space<vmem>>, vector<8x1xf32>
    %28 = arith.extui %9 : vector<8x128xi1> to vector<8x128xi32>
    %29 = arith.sitofp %28 : vector<8x128xi32> to vector<8x128xf32>
    %cst_13 = arith.constant dense<0.000000e+00> : vector<8xf32>
    %30 = vector.multi_reduction <add>, %29, %cst_13 [1] : vector<8x128xf32> to vector<8xf32>
    %31 = vector.shape_cast %30 : vector<8xf32> to vector<8x1xf32>
    %32 = arith.addf %27, %31 : vector<8x1xf32>
    %c0_14 = arith.constant 0 : index
    %c0_15 = arith.constant 0 : index
    %33 = vector.load %arg11[%c0_14, %c0_15] : memref<8x1xf32, #tpu.memory_space<vmem>>, vector<8x1xf32>
    tpu.vector_store %arg11[%c0_14, %c0_15], %32 {strides = array<i32>} : memref<8x1xf32, #tpu.memory_space<vmem>>, vector<8x1xf32>,
    %c0_i32_16 = arith.constant 0 : i32
    %34 = arith.cmpi eq, %arg1, %c0_i32_16 : i32
    %35 = arith.extui %34 : i1 to i32
    %c0_i32_17 = arith.constant 0 : i32
    %36 = arith.cmpi ne, %35, %c0_i32_17 : i32
    scf.if %36 {
      %c0_18 = arith.constant 0 : index
      %c0_19 = arith.constant 0 : index
      %37 = vector.load %arg11[%c0_18, %c0_19] : memref<8x1xf32, #tpu.memory_space<vmem>>, vector<8x1xf32>
      %cst_20 = arith.constant 1.000000e+00 : f32
      %38 = vector.broadcast %cst_20 : f32 to vector<8x1xf32>
      %39 = arith.maximumf %37, %38 : vector<8x1xf32>
      %40 = tpu.reciprocal %39 {approx = true} : vector<8x1xf32> -> vector<8x1xf32>
      %c0_21 = arith.constant 0 : index
      %c0_22 = arith.constant 0 : index
      %41 = vector.load %arg10[%c0_21, %c0_22] : memref<8x128xf32, #tpu.memory_space<vmem>>, vector<8x128xf32>
      %42 = vector.broadcast %40 : vector<8x1xf32> to vector<8x128xf32>
      %43 = arith.mulf %41, %42 : vector<8x128xf32>
      %44 = arith.truncf %43 : vector<8x128xf32> to vector<8x128xbf16>
      %c0_23 = arith.constant 0 : index
      %c0_24 = arith.constant 0 : index
      %45 = vector.load %arg5[%c0_23, %c0_24] : memref<128x128xbf16, #tpu.memory_space<vmem>>, vector<128x128xbf16>
      %cst_25 = arith.constant dense<0.000000e+00> : vector<8x128xf32>
      %46 = tpu.matmul %44, %45, %cst_25 {dimension_numbers = #tpu.dot_dimension_numbers<[1], [0], [0], [1], [0, 0, 1, 1], [], []>} : vector<8x128xbf16>, vector<128x128xbf16>, vector<8x128xf32> -> vector<8x128xf32>
      %c0_26 = arith.constant 0 : index
      %c0_27 = arith.constant 0 : index
      %47 = vector.load %arg6[%c0_26, %c0_27] : memref<1x128xf32, #tpu.memory_space<vmem>>, vector<1x128xf32>
      %48 = vector.broadcast %47 : vector<1x128xf32> to vector<8x128xf32>
      %49 = arith.addf %46, %48 : vector<8x128xf32>
      %50 = arith.negf %49 : vector<8x128xf32>
      %51 = math.exp %50 : vector<8x128xf32>
      %cst_28 = arith.constant 1.000000e+00 : f32
      %52 = vector.broadcast %cst_28 : f32 to vector<8x128xf32>
      %53 = arith.addf %52, %51 : vector<8x128xf32>
      %54 = arith.divf %52, %53 : vector<8x128xf32>
      %55 = arith.truncf %54 : vector<8x128xf32> to vector<8x128xbf16>
      %c0_29 = arith.constant 0 : index
      %c0_30 = arith.constant 0 : index
      %56 = vector.load %arg7[%c0_29, %c0_30] : memref<128x128xbf16, #tpu.memory_space<vmem>>, vector<128x128xbf16>
      %cst_31 = arith.constant dense<0.000000e+00> : vector<8x128xf32>
      %57 = tpu.matmul %55, %56, %cst_31 {dimension_numbers = #tpu.dot_dimension_numbers<[1], [0], [0], [1], [0, 0, 1, 1], [], []>} : vector<8x128xbf16>, vector<128x128xbf16>, vector<8x128xf32> -> vector<8x128xf32>
      %c0_32 = arith.constant 0 : index
      %c0_33 = arith.constant 0 : index
      %58 = vector.load %arg8[%c0_32, %c0_33] : memref<1x128xf32, #tpu.memory_space<vmem>>, vector<1x128xf32>
      %59 = vector.broadcast %58 : vector<1x128xf32> to vector<8x128xf32>
      %60 = arith.addf %57, %59 : vector<8x128xf32>
      %61 = arith.negf %60 : vector<8x128xf32>
      %62 = math.exp %61 : vector<8x128xf32>
      %cst_34 = arith.constant 1.000000e+00 : f32
      %63 = vector.broadcast %cst_34 : f32 to vector<8x128xf32>
      %64 = arith.addf %63, %62 : vector<8x128xf32>
      %65 = arith.divf %63, %64 : vector<8x128xf32>
      %c0_35 = arith.constant 0 : index
      %c0_36 = arith.constant 0 : index
      %66 = vector.load %arg9[%c0_35, %c0_36] : memref<8x128xf32, #tpu.memory_space<vmem>>, vector<8x128xf32>
      tpu.vector_store %arg9[%c0_35, %c0_36], %65 {strides = array<i32>} : memref<8x128xf32, #tpu.memory_space<vmem>>, vector<8x128xf32>,
    } else {
    }
    return
  }
  func.func @transform_0(%arg0: i32, %arg1: i32) -> (i32, i32) {
    %c0_i32 = arith.constant 0 : i32
    %c0_i32_0 = arith.constant 0 : i32
    return %c0_i32, %arg1 : i32, i32
  }
  func.func @transform_1(%arg0: i32, %arg1: i32) -> (i32, i32) {
    %c0_i32 = arith.constant 0 : i32
    %c0_i32_0 = arith.constant 0 : i32
    return %arg1, %c0_i32 : i32, i32
  }
  func.func @transform_2(%arg0: i32, %arg1: i32) -> (i32, i32) {
    %c0_i32 = arith.constant 0 : i32
    %c0_i32_0 = arith.constant 0 : i32
    %c0_i32_1 = arith.constant 0 : i32
    return %c0_i32, %c0_i32_0 : i32, i32
  }
  func.func @transform_3(%arg0: i32, %arg1: i32) -> (i32, i32) {
    %c0_i32 = arith.constant 0 : i32
    %c0_i32_0 = arith.constant 0 : i32
    %c0_i32_1 = arith.constant 0 : i32
    return %c0_i32, %c0_i32_0 : i32, i32
  }
  func.func @transform_4(%arg0: i32, %arg1: i32) -> (i32, i32) {
    %c0_i32 = arith.constant 0 : i32
    %c0_i32_0 = arith.constant 0 : i32
    %c0_i32_1 = arith.constant 0 : i32
    return %c0_i32, %c0_i32_0 : i32, i32
  }
  func.func @transform_5(%arg0: i32, %arg1: i32) -> (i32, i32) {
    %c0_i32 = arith.constant 0 : i32
    %c0_i32_0 = arith.constant 0 : i32
    %c0_i32_1 = arith.constant 0 : i32
    return %c0_i32, %c0_i32_0 : i32, i32
  }
  func.func @transform_6(%arg0: i32, %arg1: i32) -> (i32, i32) {
    %c0_i32 = arith.constant 0 : i32
    %c0_i32_0 = arith.constant 0 : i32
    %c0_i32_1 = arith.constant 0 : i32
    return %c0_i32, %c0_i32_0 : i32, i32
  }
  func.func @transform_7(%arg0: i32, %arg1: i32) -> (i32, i32) {
    %c0_i32 = arith.constant 0 : i32
    %c0_i32_0 = arith.constant 0 : i32
    return %arg0, %c0_i32 : i32, i32
  }
}

</mosaic_0001>

<bundles_post_ra>
// kernel: custom-call.1
= control target key start
LH: loop header
LB: loop body
LE: loop exit
PB: predicated region body
PF: predicated region fallthrough
CT: control target
= control target key end

     0   :  { %s6_s0 = inlined_call_operand.vmem [shape: u32[40], index: 0, kind: output, shape index: {}]  }

// kernel: text_sentiment_forward.1
= control target key start
LH: loop header
LB: loop body
LE: loop exit
PB: predicated region body
PF: predicated region fallthrough
CT: control target
= control target key end

     0   :  { %s1335_s24 = smov 0   ;;  %s1337_s25 = smov 0   ;;  %s1555_s0 = inlined_call_operand.vmem [shape: s32[1,128], index: 0, kind: input, shape index: {}]   ;;  %s1556_s1 = inlined_call_operand.vmem [shape: s32[128,1], index: 1, kind: input, shape index: {}]   ;;  %s1557_s2 = inlined_call_operand.vmem [shape: bf16[128,128], index: 2, kind: input, shape index: {}]   ;;  %s1558_s3 = inlined_call_operand.vmem [shape: bf16[128,128], index: 3, kind: input, shape index: {}]   ;;  %s1559_s4 = inlined_call_operand.vmem [shape: f32[1,128], index: 4, kind: input, shape index: {}]   ;;  %s1560_s5 = inlined_call_operand.vmem [shape: bf16[128,128], index: 5, kind: input, shape index: {}]   ;;  %s1561_s6 = inlined_call_operand.vmem [shape: f32[1,128], index: 6, kind: input, shape index: {}]   ;;  %s1562_s7 = inlined_call_operand.vmem [shape: f32[16,128], index: 7, kind: output, shape index: {}]  }
   0x1   :  { %s1339_s26 = smov 0  }
   0x2 LB: > { %s29_s27 = sadd.s32 1, %s1285_s25  ;;  %p999_p0 = scmp.ge.s32.totalorder %s1289_s26, 1  ;;  %s1289_s26 = sphi %s1339_s26, %s17_s26   ;;  %s1285_s25 = sphi %s1337_s25, %s1564_s25   ;;  %s1281_s24 = sphi %s1335_s24, %s1563_s24  }
   0x3   : > { %p31_p1 = scmp.ge.s32.totalorder %s29_s27, 2  ;;  %p258_p2 = scmp.lt.s32.totalorder %s1289_s26, 3 }
   0x5   : > { %s1566_s27 = smov (%p31_p1, %s29_s27), 0  ;;  %p259_p3 = pnand %p999_p0, %p258_p2 }
   0x6   : > { %v331_v0 = vld [vmem:[%s1556_s1 + $0x10] sm:$0xff] (!%p259_p3)  ;;  %v329_v1 = vld [vmem:[%s1556_s1] sm:$0xff] (!%p259_p3)  ;;  %v1291_v2 = vmov (!%p259_p3), 0   ;;  %v332_v3 = vld [vmem:[%s1556_s1 + $0x18] sm:$0xff] (!%p259_p3)  ;;  %v1292_v5 = vmov (!%p259_p3), 0.0   ;;  %v313_v26 = vlaneseq (!%p259_p3)  ;;  %s1001_s15 = sshll.u32 (!%p259_p3), %s1281_s24, 3 }
   0x7   : > { %262 = sbr.rel (%p259_p3) target bundleno = 1091 (0x443), region = 48  ;;  %1232 = vset.pattern.permute.xlu1 (!%p259_p3), %v1291_v2  ;;  %1231 = vset.pattern.permute.xlu0 (!%p259_p3), %v1291_v2  ;;  %v330_v4 = vld [vmem:[%s1556_s1 + $0x8] sm:$0xff] (!%p259_p3)  ;;  %v1233_v7 = vld [vmem:[%s1557_s2] sm:$0xff] (!%p259_p3)   ;;  %v336_v10 = vld [vmem:[%s1556_s1 + $0x38] sm:$0xff] (!%p259_p3)  ;;  %v316_v28 = vstv (!%p259_p3), %s1001_s15  ;;  %vm311_vm1 = vcmask (!%p259_p3), 7168   ;;  %p301_p4 = scmp.lt.s32.totalorder (!%p259_p3), %s1281_s24, 1 }
   0x8   : > { %352 = vperm.xlu1 (!%p259_p3), %1232, %v331_v0   ;;  %346 = vperm.xlu0 (!%p259_p3), %1231, %v329_v1   ;;  %v334_v6 = vld [vmem:[%s1556_s1 + $0x28] sm:$0xff] (!%p259_p3)  ;;  %v333_v8 = vld [vmem:[%s1556_s1 + $0x20] sm:$0xff] (!%p259_p3)  ;;  %v335_v11 = vld [vmem:[%s1556_s1 + $0x30] sm:$0xff] (!%p259_p3)  ;;  %v314_v27 = vshrl.u32 (!%p259_p3), %v313_v26, 7  ;;  %312 = vst.msk [vmem:[#allocation3] sm:$0xff] (!%p259_p3), %vm311_vm1, %v1292_v5  ;;  %v328_v34 = vand.u32 (!%p259_p3), 127, %v313_v26 }
   0x9   : > { %1143 = vmatprep.subr.bf16.mxu1 (!%p259_p3), %v1292_v5  ;;  %v1234_v9 = vld [vmem:[%s1557_s2 + $0x8] sm:$0xff] (!%p259_p3)   ;;  %1111 = vmatprep.subr.bf16.mxu0 (!%p259_p3), %v1233_v7  ;;  %v1235_v12 = vld [vmem:[%s1557_s2 + $0x10] sm:$0xff] (!%p259_p3)   ;;  %v337_v14 = vld [vmem:[%s1556_s1 + $0x40] sm:$0xff] (!%p259_p3)  ;;  %v1293_v37 = vmov (!%p259_p3), 1.0|1.0  }
   0xa   : > { %1112 = vmatpush3.bf16.msra.mxu0 (!%p259_p3), %v1233_v7  ;;  %v338_v13 = vld [vmem:[%s1556_s1 + $0x48] sm:$0xff] (!%p259_p3)  ;;  %v1236_v15 = vld [vmem:[%s1557_s2 + $0x18] sm:$0xff] (!%p259_p3)   ;;  %v339_v17 = vld [vmem:[%s1556_s1 + $0x50] sm:$0xff] (!%p259_p3)  ;;  %v1430_v29 = vadd.s32 (!%p259_p3), %v316_v28, %v314_v27 }
   0xb   : > { %1113 = vmatprep.subr.bf16.mxu0 (!%p259_p3), %v1234_v9  ;;  %v340_v16 = vld [vmem:[%s1556_s1 + $0x58] sm:$0xff] (!%p259_p3)  ;;  %v1237_v18 = vld [vmem:[%s1557_s2 + $0x20] sm:$0xff] (!%p259_p3)   ;;  %v342_v19 = vld [vmem:[%s1556_s1 + $0x68] sm:$0xff] (!%p259_p3) }
   0xc   : > { %355 = vperm.xlu1 (!%p259_p3), %1232, %v332_v3   ;;  %349 = vperm.xlu0 (!%p259_p3), %1231, %v330_v4   ;;  %v341_v20 = vld [vmem:[%s1556_s1 + $0x60] sm:$0xff] (!%p259_p3)  ;;  %v1238_v21 = vld [vmem:[%s1557_s2 + $0x28] sm:$0xff] (!%p259_p3)   ;;  %v344_v22 = vld [vmem:[%s1556_s1 + $0x78] sm:$0xff] (!%p259_p3) }
   0xd   : > { %v343_v23 = vld [vmem:[%s1556_s1 + $0x70] sm:$0xff] (!%p259_p3)  ;;  %v1240_v25 = vld [vmem:[%s1557_s2 + $0x38] sm:$0xff] (!%p259_p3)   ;;  %v1435_v30 = vld [vmem:[%s1555_s0] ss:$0 sm:$0xff] (!%p259_p3) }
   0xe   : > { %1114 = vmatpush3.bf16.msra.mxu0 %v1234_v9  ;;  %v1239_v24 = vld [vmem:[%s1557_s2 + $0x30] sm:$0xff]   ;;  %vm323_vm0 = vcmp.eq.s32.totalorder %v1430_v29, %v1435_v30  ;;  %v1241_v56 = vld [vmem:[%s1558_s3] sm:$0xff]   ;;  %v1242_v57 = vld [vmem:[%s1558_s3 + $0x8] sm:$0xff]   ;;  %s1568_s24 = smov (!%p301_p4, %s1281_s24), 1 }
   0xf   : > { %1115 = vmatprep.subr.bf16.mxu0 %v1235_v12  ;;  %v1003_v31 = vsel %vm323_vm0, 1.0, %v1292_v5  ;;  %v661_v50 = vld [vmem:[#allocation3] sm:$0xff]  ;;  %v1243_v58 = vld [vmem:[%s1558_s3 + $0x10] sm:$0xff]   ;;  %v1244_v59 = vld [vmem:[%s1558_s3 + $0x18] sm:$0xff]   ;;  %s1000_s16 = sshll.u32 %s1568_s24, 3 }
  0x10   : > { %361 = vperm.xlu1 %1232, %v334_v6   ;;  %358 = vperm.xlu0 %1231, %v333_v8   ;;  %v1245_v60 = vld [vmem:[%s1558_s3 + $0x20] sm:$0xff]   ;;  %v1246_v61 = vld [vmem:[%s1558_s3 + $0x28] sm:$0xff]   ;;  %v1247_v62 = vld [vmem:[%s1558_s3 + $0x30] sm:$0xff]   ;;  %s304_s19 = scalar_lea.vmem %s1562_s7, %s1000_s16 }
  0x12   : > { %1116 = vmatpush3.bf16.msra.mxu0 %v1235_v12 }
  0x13   : > { %1117 = vmatprep.subr.bf16.mxu0 %v1236_v15 }
  0x14   : > { %367 = vperm.xlu1 %1232, %v336_v10   ;;  %364 = vperm.xlu0 %1231, %v335_v11  }
  0x16   : > { %1118 = vmatpush3.bf16.msra.mxu0 %v1236_v15 }
  0x17   : > { %1119 = vmatprep.subr.bf16.mxu0 %v1237_v18 }
  0x18   : > { %373 = vperm.xlu1 %1232, %v338_v13   ;;  %370 = vperm.xlu0 %1231, %v337_v14  }
  0x1a   : > { %1120 = vmatpush3.bf16.msra.mxu0 %v1237_v18 }
  0x1b   : > { %1121 = vmatprep.subr.bf16.mxu0 %v1238_v21 }
  0x1c   : > { %379 = vperm.xlu1 %1232, %v340_v16   ;;  %376 = vperm.xlu0 %1231, %v339_v17  }
  0x1e   : > { %1122 = vmatpush3.bf16.msra.mxu0 %v1238_v21 }
  0x1f   : > { %1123 = vmatprep.subr.bf16.mxu0 %v1239_v24 }
  0x20   : > { %385 = vperm.xlu1 %1232, %v342_v19   ;;  %382 = vperm.xlu0 %1231, %v341_v20  }
  0x22   : > { %1124 = vmatpush3.bf16.msra.mxu0 %v1239_v24  ;;  %v1248_v24 = vld [vmem:[%s1558_s3 + $0x38] sm:$0xff]  }
  0x23   : > { %1125 = vmatprep.subr.bf16.mxu0 %v1240_v25 }
  0x24   : > { %391 = vperm.xlu1 %1232, %v344_v22   ;;  %388 = vperm.xlu0 %1231, %v343_v23  }
  0x26   : > { %1126 = vmatpush3.bf16.msra.mxu0 %v1240_v25 }
  0x27   : > { %1163 = vmatprep.subr.bf16.mxu0 %v1292_v5 }
  0x43   : > { %662 = vadd.xlane.f32.xlu0 %v1003_v31 }
  0x87   : > { %v353_v32 = vpop.permute.xlu1 %352  ;;  %v347_v33 = vpop.permute.xlu0 %346 }
  0x88   : > { %vm395_vm2 = vcmp.eq.s32.totalorder %v328_v34, %v353_v32  ;;  %vm393_vm5 = vcmp.eq.s32.totalorder %v328_v34, %v347_v33  ;;  %v1249_v32 = vld [vmem:[%s1560_s5] sm:$0xff]   ;;  %v1250_v33 = vld [vmem:[%s1560_s5 + $0x8] sm:$0xff]  }
  0x8b   : > { %v356_v35 = vpop.permute.xlu1 %355  ;;  %v350_v36 = vpop.permute.xlu0 %349 }
  0x8c   : > { %vm396_vm3 = vcmp.eq.s32.totalorder %v328_v34, %v356_v35  ;;  %vm394_vm4 = vcmp.eq.s32.totalorder %v328_v34, %v350_v36  ;;  %v1252_v35 = vld [vmem:[%s1560_s5 + $0x18] sm:$0xff]   ;;  %v1253_v36 = vld [vmem:[%s1560_s5 + $0x20] sm:$0xff]  }
  0x8d   : > { %vm1030_vm6 = vmpackc.low %vm396_vm3, %vm395_vm2 }
  0x8e   : > { %vm1028_vm7 = vmpackc.low %vm394_vm4, %vm393_vm5 }
  0x8f   : > { %1127 = vmatprep.mubr.msk.bf16.mxu0 %vm1028_vm7, %v1293_v37  ;;  %v362_v38 = vpop.permute.xlu1 %361  ;;  %v359_v39 = vpop.permute.xlu0 %358 }
  0x90   : > { %vm398_vm8 = vcmp.eq.s32.totalorder %v328_v34, %v362_v38  ;;  %vm397_vm9 = vcmp.eq.s32.totalorder %v328_v34, %v359_v39  ;;  %1128 = vmatmul.mubr.msk.bf16.vlgmr.msra.gmra.mrb[0].mxu0 %vm1030_vm6, %v1293_v37  ;;  %v1255_v38 = vld [vmem:[%s1560_s5 + $0x30] sm:$0xff]   ;;  %v1256_v39 = vld [vmem:[%s1560_s5 + $0x38] sm:$0xff]  }
  0x91   : > { %vm1032_vm10 = vmpackc.low %vm398_vm8, %vm397_vm9  ;;  %1164 = vmatpush3.bf16.msra.mxu0 %v1241_v56 }
  0x92   : > { %1131 = vmatprep.mubr.msk.bf16.mxu0 %vm1032_vm10, %v1293_v37  ;;  %1165 = vmatprep.subr.bf16.mxu0 %v1292_v5 }
  0x93   : > { %v368_v40 = vpop.permute.xlu1 %367  ;;  %v365_v41 = vpop.permute.xlu0 %364 }
  0x94   : > { %vm400_vm11 = vcmp.eq.s32.totalorder %v328_v34, %v368_v40  ;;  %vm399_vm12 = vcmp.eq.s32.totalorder %v328_v34, %v365_v41  ;;  %v1046_v40 = vld [vmem:[%s1559_s4] ss:$0 sm:$0xff] }
  0x95   : > { %vm1034_vm13 = vmpackc.low %vm400_vm11, %vm399_vm12  ;;  %vm1294_vm12 = vmmov 0   ;;  %1166 = vmatpush3.bf16.msra.mxu0 %v1242_v57 }
  0x96   : > { %1159 = vmatprep.mubr.msk.bf16.mxu1 %vm1294_vm12, %v1292_v5  ;;  %1167 = vmatprep.subr.bf16.mxu0 %v1292_v5 }
  0x97   : > { %v374_v42 = vpop.permute.xlu1 %373  ;;  %v371_v43 = vpop.permute.xlu0 %370 }
  0x98   : > { %vm402_vm14 = vcmp.eq.s32.totalorder %v328_v34, %v374_v42  ;;  %vm401_vm15 = vcmp.eq.s32.totalorder %v328_v34, %v371_v43  ;;  %1132 = vmatmul.mubr.msk.bf16.gmra.mrb[4].mxu0 %vm1034_vm13, %v1293_v37 }
  0x99   : > { %vm1036_vm2 = vmpackc.low %vm402_vm14, %vm401_vm15  ;;  %1168 = vmatpush3.bf16.msra.mxu0 %v1243_v58 }
  0x9a   : > { %1135 = vmatprep.mubr.msk.bf16.mxu0 %vm1036_vm2, %v1293_v37  ;;  %1169 = vmatprep.subr.bf16.mxu0 %v1292_v5 }
  0x9b   : > { %v380_v44 = vpop.permute.xlu1 %379  ;;  %v377_v45 = vpop.permute.xlu0 %376 }
  0x9c   : > { %vm404_vm3 = vcmp.eq.s32.totalorder %v328_v34, %v380_v44  ;;  %vm403_vm4 = vcmp.eq.s32.totalorder %v328_v34, %v377_v45 }
  0x9d   : > { %vm1038_vm5 = vmpackc.low %vm404_vm3, %vm403_vm4  ;;  %1170 = vmatpush3.bf16.msra.mxu0 %v1244_v59 }
  0x9e   : > { %1171 = vmatprep.subr.bf16.mxu0 %v1292_v5 }
  0x9f   : > { %v386_v46 = vpop.permute.xlu1 %385  ;;  %v383_v47 = vpop.permute.xlu0 %382 }
  0xa0   : > { %vm406_vm6 = vcmp.eq.s32.totalorder %v328_v34, %v386_v46  ;;  %vm405_vm7 = vcmp.eq.s32.totalorder %v328_v34, %v383_v47  ;;  %1136 = vmatmul.mubr.msk.bf16.gmra.mrb[8].mxu0 %vm1038_vm5, %v1293_v37 }
  0xa1   : > { %vm1040_vm8 = vmpackc.low %vm406_vm6, %vm405_vm7  ;;  %1172 = vmatpush3.bf16.msra.mxu0 %v1245_v60 }
  0xa2   : > { %1139 = vmatprep.mubr.msk.bf16.mxu0 %vm1040_vm8, %v1293_v37  ;;  %1173 = vmatprep.subr.bf16.mxu0 %v1292_v5 }
  0xa3   : > { %v392_v48 = vpop.permute.xlu1 %391  ;;  %v389_v49 = vpop.permute.xlu0 %388 }
  0xa4   : > { %vm408_vm9 = vcmp.eq.s32.totalorder %v328_v34, %v392_v48  ;;  %vm407_vm10 = vcmp.eq.s32.totalorder %v328_v34, %v389_v49  ;;  %v1251_v34 = vld [vmem:[%s1560_s5 + $0x10] sm:$0xff]  }
  0xa5   : > { %vm1042_vm11 = vmpackc.low %vm408_vm9, %vm407_vm10  ;;  %1174 = vmatpush3.bf16.msra.mxu0 %v1246_v61 }
  0xa6   : > { %1175 = vmatprep.subr.bf16.mxu0 %v1292_v5 }
  0xa8   : > { %1140 = vmatmul.mubr.msk.bf16.gmra.mrb[12].mxu0 %vm1042_vm11, %v1293_v37 }
  0xa9   : > { %1179 = vmatprep.mubr.msk.bf16.mxu0 %vm1294_vm12, %v1292_v5  ;;  %1176 = vmatpush3.bf16.msra.mxu0 %v1247_v62 }
  0xaa   : > { %1177 = vmatprep.subr.bf16.mxu0 %v1292_v5 }
  0xad   : > { %1178 = vmatpush3.bf16.msra.mxu0 %v1248_v24 }
  0xd0   : > { %v663_v51 = vpop.xlane.xlu0 %662 }
  0xd1   : > { %v664_v52 = vadd.f32 %v663_v51, %v661_v50 }
  0xd3   : > { %666 = vst.msk [vmem:[#allocation3] sm:$0xff] %vm311_vm1, %v664_v52  ;;  %vm1044_vm1 = vmpackc.low %vm323_vm0, %vm323_vm0 }
  0xda   : > { %v670_v53 = vld [vmem:[#allocation3] sm:$0xff] }
  0xdb   : > { %v671_v54 = vmax.f32 %v670_v53, 1.0 }
  0xdd   : > { %1257 = vrcp.f32 %v671_v54 }
  0xe7   : > { %v1258_v55 = vpop.eup %1257 }
  0xe8   : > { %676 = vperm.xlu1 %1232, %v1258_v55  }
 0x163   : > { %v1129_v63 = vpop.f32.mrb[0].mxu0 }
 0x164   : > { %v547_v0 = vpop.f32.mrb[1].mxu0 }
 0x165   : > { %v1130_v1 = vpop.f32.mrb[2].mxu0 }
 0x166   : > { %v612_v2 = vpack.c.bf16 %v1130_v1, %v1129_v63  ;;  %v550_v3 = vpop.f32.mrb[3].mxu0 }
 0x167   : > { %v611_v4 = vpack.c.bf16 %v550_v3, %v547_v0  ;;  %v677_v25 = vpop.permute.xlu1 %676 }
 0x169   : > { %1144 = vmatpush3.bf16.msra.mxu1 %v611_v4 }
 0x16a   : > { %1145 = vmatprep.subr.bf16.mxu1 %v1292_v5 }
 0x16b   : > { %v1133_v6 = vpop.f32.mrb[4].mxu0 }
 0x16c   : > { %v563_v7 = vpop.f32.mrb[5].mxu0 }
 0x16d   : > { %v1134_v8 = vpop.f32.mrb[6].mxu0  ;;  %1146 = vmatpush3.bf16.msra.mxu1 %v612_v2 }
 0x16e   : > { %v614_v9 = vpack.c.bf16 %v1134_v8, %v1133_v6  ;;  %v566_v10 = vpop.f32.mrb[7].mxu0  ;;  %1147 = vmatprep.subr.bf16.mxu1 %v1292_v5 }
 0x16f   : > { %v613_v11 = vpack.c.bf16 %v566_v10, %v563_v7 }
 0x171   : > { %1148 = vmatpush3.bf16.msra.mxu1 %v613_v11 }
 0x172   : > { %1149 = vmatprep.subr.bf16.mxu1 %v1292_v5 }
 0x173   : > { %v1137_v12 = vpop.f32.mrb[8].mxu0 }
 0x174   : > { %v579_v13 = vpop.f32.mrb[9].mxu0 }
 0x175   : > { %v1138_v14 = vpop.f32.mrb[10].mxu0  ;;  %1150 = vmatpush3.bf16.msra.mxu1 %v614_v9 }
 0x176   : > { %v616_v15 = vpack.c.bf16 %v1138_v14, %v1137_v12  ;;  %v582_v16 = vpop.f32.mrb[11].mxu0  ;;  %1151 = vmatprep.subr.bf16.mxu1 %v1292_v5 }
 0x177   : > { %v615_v17 = vpack.c.bf16 %v582_v16, %v579_v13 }
 0x179   : > { %1152 = vmatpush3.bf16.msra.mxu1 %v615_v17 }
 0x17a   : > { %1153 = vmatprep.subr.bf16.mxu1 %v1292_v5 }
 0x17b   : > { %v1141_v18 = vpop.f32.mrb[12].mxu0 }
 0x17c   : > { %v595_v19 = vpop.f32.mrb[13].mxu0 }
 0x17d   : > { %v1142_v20 = vpop.f32.mrb[14].mxu0  ;;  %1154 = vmatpush3.bf16.msra.mxu1 %v616_v15 }
 0x17e   : > { %v618_v21 = vpack.c.bf16 %v1142_v20, %v1141_v18  ;;  %v598_v22 = vpop.f32.mrb[15].mxu0  ;;  %1155 = vmatprep.subr.bf16.mxu1 %v1292_v5 }
 0x17f   : > { %v617_v23 = vpack.c.bf16 %v598_v22, %v595_v19 }
 0x181   : > { %1156 = vmatpush3.bf16.msra.mxu1 %v617_v23 }
 0x182   : > { %1157 = vmatprep.subr.bf16.mxu1 %v1292_v5 }
 0x185   : > { %1158 = vmatpush3.bf16.msra.mxu1 %v618_v21 }
 0x186   : > { %1183 = vmatprep.subr.bf16.mxu1 %v1292_v5 }
 0x188   : > { %1160 = vmatmul.mubr.msk.bf16.vlgmr.msra.gmra.mrb[0].mxu1 %vm1044_vm1, %v1293_v37  ;;  %v1254_v37 = vld [vmem:[%s1560_s5 + $0x28] sm:$0xff]  }
 0x189   : > { %1199 = vmatprep.mubr.msk.bf16.mxu1 %vm1294_vm12, %v1292_v5  ;;  %1184 = vmatpush3.bf16.msra.mxu1 %v1249_v32 }
 0x18a   : > { %1185 = vmatprep.subr.bf16.mxu1 %v1292_v5 }
 0x18d   : > { %1186 = vmatpush3.bf16.msra.mxu1 %v1250_v33 }
 0x18e   : > { %1187 = vmatprep.subr.bf16.mxu1 %v1292_v5 }
 0x191   : > { %1188 = vmatpush3.bf16.msra.mxu1 %v1251_v34 }
 0x192   : > { %1189 = vmatprep.subr.bf16.mxu1 %v1292_v5 }
 0x195   : > { %1190 = vmatpush3.bf16.msra.mxu1 %v1252_v35 }
 0x196   : > { %1191 = vmatprep.subr.bf16.mxu1 %v1292_v5 }
 0x199   : > { %1192 = vmatpush3.bf16.msra.mxu1 %v1253_v36 }
 0x19a   : > { %1193 = vmatprep.subr.bf16.mxu1 %v1292_v5 }
 0x19d   : > { %1194 = vmatpush3.bf16.msra.mxu1 %v1254_v37 }
 0x19e   : > { %1195 = vmatprep.subr.bf16.mxu1 %v1292_v5 }
 0x1a1   : > { %1196 = vmatpush3.bf16.msra.mxu1 %v1255_v38 }
 0x1a2   : > { %1197 = vmatprep.subr.bf16.mxu1 %v1292_v5  ;;  %v1056_v5 = vld [vmem:[%s1561_s6] ss:$0 sm:$0xff] }
 0x1a5   : > { %1198 = vmatpush3.bf16.msra.mxu1 %v1256_v39 }
 0x25b   : > { %v653_v26 = vpop.f32.mrb[0].mxu1 }
 0x25c   : > { %v679_v27 = vmul.f32 %v677_v25, %v653_v26  ;;  %v1161_v28 = vpop.f32.mrb[1].mxu1 }
 0x25d   : > { %v656_v29 = vpop.f32.mrb[2].mxu1 }
 0x25e   : > { %v680_v30 = vpack.c.bf16 %v679_v27, %v679_v27  ;;  %v1162_v31 = vpop.f32.mrb[3].mxu1 }
 0x260   : > { %1180 = vmatmul.mubr.bf16.vlgmr.msra.gmra.mrb[16].mxu0 %v680_v30 }
 0x333   : > { %v786_v41 = vpop.f32.mrb[16].mxu0 }
 0x334   : > { %v787_v42 = vadd.f32 %v1046_v40, %v786_v41  ;;  %v1181_v43 = vpop.f32.mrb[17].mxu0 }
 0x335   : > { %v789_v44 = vpop.f32.mrb[18].mxu0 }
 0x336   : > { %v1055_v45 = vmul.f32 -1.442695, %v787_v42  ;;  %v1182_v46 = vpop.f32.mrb[19].mxu0 }
 0x338   : > { %1259 = vpow2.f32 %v1055_v45 }
 0x342   : > { %v1260_v47 = vpop.eup %1259 }
 0x343   : > { %v795_v48 = vadd.f32 1.0, %v1260_v47 }
 0x345   : > { %1261 = vrcp.f32 %v795_v48 }
 0x34f   : > { %v1262_v49 = vpop.eup %1261 }
 0x350   : > { %v798_v50 = vpack.c.bf16 %v1262_v49, %v1262_v49 }
 0x352   : > { %1200 = vmatmul.mubr.bf16.vlgmr.msra.gmra.mrb[4].mxu1 %v798_v50 }
 0x425   : > { %v904_v51 = vpop.f32.mrb[4].mxu1 }
 0x426   : > { %v905_v52 = vadd.f32 %v1056_v5, %v904_v51  ;;  %v1201_v53 = vpop.f32.mrb[5].mxu1 }
 0x427   : > { %v907_v54 = vpop.f32.mrb[6].mxu1 }
 0x428   : > { %v1065_v55 = vmul.f32 -1.442695, %v905_v52  ;;  %v1202_v56 = vpop.f32.mrb[7].mxu1 }
 0x42a   : > { %1263 = vpow2.f32 %v1065_v55 }
 0x434   : > { %v1264_v57 = vpop.eup %1263 }
 0x435   : > { %v913_v58 = vadd.f32 1.0, %v1264_v57 }
 0x437   : > { %1265 = vrcp.f32 %v913_v58 }
 0x441   : > { %v1266_v59 = vpop.eup %1265 }
 0x442   : > { %916 = vst [vmem:[%s304_s19] sm:$0xff] %v1266_v59 }
 0x443 PF: > { %s17_s26 = sadd.s32 1, %s1289_s26   ;;  %s1563_s24 = smov %s1285_s25 }
 0x444   : > { %p14_p5 = scmp.ge.s32.totalorder %s17_s26, 4   ;;  %s1564_s25 = smov %s1566_s27 }
 0x446   :  { %16 = sbr.rel (!%p14_p5) target bundleno = 2 (0x2), region = 89 }

</bundles_post_ra>
